<compile_context>
chip_gen: v5e
topology: v5e:2x2
jax: 0.10.0
libtpu: 0.0.40
codegen_flags: <defaults>
</compile_context>

<pallas_src>
import functools

import jax
import jax.numpy as jnp
from jax import lax
from jax.experimental import pallas as pl
from jax.experimental.pallas import tpu as pltpu


def _round_up(x, m):
    return (x + m - 1) // m * m


def _flash_attn_kernel(q_ref, k_ref, v_ref, o_ref,
                       m_scr, l_scr, acc_scr,
                       *, sk_actual, tk):
    """Flash attention over pre-projected tiles.  q_ref: (1,TQ,Dp), k/v_ref: (1,TK,Dp)."""
    ki = pl.program_id(2)
    nk = pl.num_programs(2)

    @pl.when(ki == 0)
    def _init():
        m_scr[...] = jnp.full(m_scr.shape, -jnp.inf, m_scr.dtype)
        l_scr[...] = jnp.zeros(l_scr.shape, l_scr.dtype)
        acc_scr[...] = jnp.zeros(acc_scr.shape, acc_scr.dtype)

    q = q_ref[0]                                                       # (TQ, Dp) mxu dtype
    k = k_ref[0]                                                       # (TK, Dp)
    v = v_ref[0]                                                       # (TK, Dp)

    # scores = Q @ K^T (scale already folded into the hoisted Q projection).
    s = lax.dot_general(q, k,
                        dimension_numbers=(((1,), (1,)), ((), ())),
                        preferred_element_type=jnp.float32)            # (TQ, TK) f32

    if sk_actual % tk != 0:
        # Only the last kv tile can contain padded key positions: gate the mask so the
        # iota/compare/select cost is paid on that single step only.
        def _mask(s_):
            col = ki * tk + lax.broadcasted_iota(jnp.int32, s_.shape, 1)
            return jnp.where(col < sk_actual, s_, -1e30)

        s = lax.cond(ki == nk - 1, _mask, lambda s_: s_, s)

    # Online softmax update (all stats f32).
    m_prev = m_scr[...]                                                # (TQ, 1)
    m_new = jnp.maximum(m_prev, jnp.max(s, axis=-1, keepdims=True))
    alpha = jnp.exp(m_prev - m_new)
    p = jnp.exp(s - m_new)                                             # (TQ, TK) f32
    l_scr[...] = alpha * l_scr[...] + jnp.sum(p, axis=-1, keepdims=True)
    acc_scr[...] = alpha * acc_scr[...] + jnp.dot(
        p.astype(v.dtype), v, preferred_element_type=jnp.float32)
    m_scr[...] = m_new

    @pl.when(ki == nk - 1)
    def _finalize():
        # approx reciprocal: EUP fast path; swap to approx=False if tighter precision is
        # required downstream.
        inv_l = pl.reciprocal(l_scr[...], approx=True)
        o_ref[0] = (acc_scr[...] * inv_l).astype(o_ref.dtype)


def attention_head(query, key, value, params, *, tq_max=256, tk_max=1024):
    """query: (B, Sq, Din), key/value: (B, Sk, Din).  Returns (B, Sq, key_dim)."""
    wq, bq, wk, bk, wv, bv = params
    B, Sq, Din = query.shape
    _, Sk, _ = key.shape
    Dq = wq.shape[1]
    Dk = wk.shape[1]
    assert Dq == Dk, "query_dim must equal key_dim for Q @ K^T"

    out_dtype = query.dtype
    scale = 1.0 / (float(Dq) ** 0.5)

    # --- Hoisted projections (plain XLA GEMMs), computed ONCE per call. ---
    qp = (query @ wq + bq[0]) * scale        # fold 1/sqrt(d_q) into Q
    kp = key @ wk + bk[0]
    vp = value @ wv + bv[0]

    # bf16 MXU operands for the attention matmuls when inputs are f32 (f32 accumulation and
    # softmax stats are kept inside the kernel).
    mxu_dtype = jnp.bfloat16 if out_dtype == jnp.float32 else out_dtype
    qp = qp.astype(mxu_dtype)
    kp = kp.astype(mxu_dtype)
    vp = vp.astype(mxu_dtype)

    # Lane-dense feature dim: pad to a multiple of 128 with zeros (exact after slice-off).
    Dp = _round_up(Dk, 128)

    # Sequence tiling: sublane-aligned tiles; blocks are only (tile, Dp) wide now, so the
    # default scoped-VMEM limits (16/32 MiB) comfortably hold the double-buffered pipeline
    # on v5e/v6e/v7x even at these caps.
    tq = min(tq_max, _round_up(Sq, 8))
    tk = min(tk_max, _round_up(Sk, 8))
    sq_p = _round_up(Sq, tq)
    sk_p = _round_up(Sk, tk)

    qp = jnp.pad(qp, ((0, 0), (0, sq_p - Sq), (0, Dp - Dq)))
    kp = jnp.pad(kp, ((0, 0), (0, sk_p - Sk), (0, Dp - Dk)))
    vp = jnp.pad(vp, ((0, 0), (0, sk_p - Sk), (0, Dp - Dk)))

    kernel = functools.partial(_flash_attn_kernel, sk_actual=Sk, tk=tk)
    grid = (B, sq_p // tq, sk_p // tk)

    q_spec = pl.BlockSpec((1, tq, Dp), lambda b, qi, ki: (b, qi, 0))
    kv_spec = pl.BlockSpec((1, tk, Dp), lambda b, qi, ki: (b, ki, 0))

    out = pl.pallas_call(
        kernel,
        out_shape=jax.ShapeDtypeStruct((B, sq_p, Dp), out_dtype),
        grid_spec=pltpu.PrefetchScalarGridSpec(
            num_scalar_prefetch=0,
            grid=grid,
            in_specs=[q_spec, kv_spec, kv_spec],
            out_specs=pl.BlockSpec((1, tq, Dp), lambda b, qi, ki: (b, qi, 0)),
            scratch_shapes=[
                pltpu.VMEM((tq, 1), jnp.float32),    # running max m
                pltpu.VMEM((tq, 1), jnp.float32),    # running denom l
                pltpu.VMEM((tq, Dp), jnp.float32),   # output accumulator
            ]),
        compiler_params=pltpu.CompilerParams(
            dimension_semantics=("parallel", "parallel", "arbitrary")),
    )(qp, kp, vp)

    return out[:, :Sq, :Dk]


def init_params(key, input_dim, query_dim, key_dim):
    """Deterministic init mimicking nn.Linear's uniform(-1/sqrt(fan_in), 1/sqrt(fan_in))."""
    ks = jax.random.split(key, 6)
    bound = 1.0 / (input_dim ** 0.5)
    u = lambda k, shape: jax.random.uniform(k, shape, jnp.float32, -bound, bound)
    wq = u(ks[0], (input_dim, query_dim))   # stored transposed vs torch's (out, in)
    bq = u(ks[1], (1, query_dim))
    wk = u(ks[2], (input_dim, key_dim))
    bk = u(ks[3], (1, key_dim))
    wv = u(ks[4], (input_dim, key_dim))
    bv = u(ks[5], (1, key_dim))
    return (wq, bq, wk, bk, wv, bv)


def attention_head_ref(query, key, value, params):
    """Pure-JAX reference of the PyTorch forward (full f32)."""
    wq, bq, wk, bk, wv, bv = params
    Q = query @ wq + bq[0]
    K = key @ wk + bk[0]
    V = value @ wv + bv[0]
    scores = jnp.einsum('bqd,bkd->bqk', Q, K) / (Q.shape[-1] ** 0.5)
    p = jax.nn.softmax(scores, axis=-1)
    return jnp.einsum('bqk,bkd->bqd', p, V)


if __name__ == "__main__":
    B, Sq, Sk = 2, 8, 8
    input_dim, query_dim, key_dim = 32, 16, 16

    root = jax.random.PRNGKey(0)
    k_q, k_k, k_v, k_p = jax.random.split(root, 4)
    query = jax.random.normal(k_q, (B, Sq, input_dim), jnp.float32)
    key = jax.random.normal(k_k, (B, Sk, input_dim), jnp.float32)
    value = jax.random.normal(k_v, (B, Sk, input_dim), jnp.float32)
    params = init_params(k_p, input_dim, query_dim, key_dim)

    out = attention_head(query, key, value, params)
    out = jax.block_until_ready(out)

    ref = attention_head_ref(query, key, value, params)
    assert out.shape == (B, Sq, key_dim)
    # Tolerance accounts for bf16 MXU operands, approx reciprocal, and online-softmax
    # accumulation order.
    assert jnp.allclose(out, ref, atol=2e-2, rtol=2e-2), "mismatch vs JAX reference"

    print("KERNEL_OK")
</pallas_src>

<mosaic_0001>
module attributes {stable_mosaic.version = 11 : i64} {
  func.func @_flash_attn_kernel(%arg0: i32, %arg1: i32, %arg2: i32, %arg3: memref<1x8x128xbf16, #tpu.memory_space<vmem>>, %arg4: memref<1x8x128xbf16, #tpu.memory_space<vmem>>, %arg5: memref<1x8x128xbf16, #tpu.memory_space<vmem>>, %arg6: memref<1x8x128xf32, #tpu.memory_space<vmem>>, %arg7: memref<8x1xf32, #tpu.memory_space<vmem>>, %arg8: memref<8x1xf32, #tpu.memory_space<vmem>>, %arg9: memref<8x128xf32, #tpu.memory_space<vmem>>) attributes {dimension_semantics = [#tpu.dimension_semantics<parallel>, #tpu.dimension_semantics<parallel>, #tpu.dimension_semantics<arbitrary>], iteration_bounds = array<i64: 2, 1, 1>, scalar_prefetch = 0 : i64, scratch_operands = 3 : i64, tpu.core_type = #tpu.core_type<tc>, window_params = [{transform_indices = @transform_0, window_bounds = array<i64: 1, 8, 128>}, {transform_indices = @transform_1, window_bounds = array<i64: 1, 8, 128>}, {transform_indices = @transform_2, window_bounds = array<i64: 1, 8, 128>}, {transform_indices = @transform_3, window_bounds = array<i64: 1, 8, 128>}]} {
    %c0_i32 = arith.constant 0 : i32
    %0 = arith.cmpi eq, %arg2, %c0_i32 : i32
    %1 = arith.extui %0 : i1 to i32
    %c0_i32_0 = arith.constant 0 : i32
    %2 = arith.cmpi ne, %1, %c0_i32_0 : i32
    scf.if %2 {
      %cst_26 = arith.constant 0xFF800000 : f32
      %36 = vector.broadcast %cst_26 : f32 to vector<8x1xf32>
      %c0_27 = arith.constant 0 : index
      %c0_28 = arith.constant 0 : index
      %37 = vector.load %arg7[%c0_27, %c0_28] : memref<8x1xf32, #tpu.memory_space<vmem>>, vector<8x1xf32>
      tpu.vector_store %arg7[%c0_27, %c0_28], %36 {strides = array<i32>} : memref<8x1xf32, #tpu.memory_space<vmem>>, vector<8x1xf32>,
      %cst_29 = arith.constant 0.000000e+00 : f32
      %38 = vector.broadcast %cst_29 : f32 to vector<8x1xf32>
      %c0_30 = arith.constant 0 : index
      %c0_31 = arith.constant 0 : index
      %39 = vector.load %arg8[%c0_30, %c0_31] : memref<8x1xf32, #tpu.memory_space<vmem>>, vector<8x1xf32>
      tpu.vector_store %arg8[%c0_30, %c0_31], %38 {strides = array<i32>} : memref<8x1xf32, #tpu.memory_space<vmem>>, vector<8x1xf32>,
      %cst_32 = arith.constant 0.000000e+00 : f32
      %40 = vector.broadcast %cst_32 : f32 to vector<8x128xf32>
      %c0_33 = arith.constant 0 : index
      %c0_34 = arith.constant 0 : index
      %41 = vector.load %arg9[%c0_33, %c0_34] : memref<8x128xf32, #tpu.memory_space<vmem>>, vector<8x128xf32>
      tpu.vector_store %arg9[%c0_33, %c0_34], %40 {strides = array<i32>} : memref<8x128xf32, #tpu.memory_space<vmem>>, vector<8x128xf32>,
    } else {
    }
    %c0 = arith.constant 0 : index
    %c0_1 = arith.constant 0 : index
    %c0_2 = arith.constant 0 : index
    %3 = vector.load %arg3[%c0, %c0_1, %c0_2] : memref<1x8x128xbf16, #tpu.memory_space<vmem>>, vector<1x8x128xbf16>
    %4 = vector.shape_cast %3 : vector<1x8x128xbf16> to vector<8x128xbf16>
    %c0_3 = arith.constant 0 : index
    %c0_4 = arith.constant 0 : index
    %c0_5 = arith.constant 0 : index
    %5 = vector.load %arg4[%c0_3, %c0_4, %c0_5] : memref<1x8x128xbf16, #tpu.memory_space<vmem>>, vector<1x8x128xbf16>
    %6 = vector.shape_cast %5 : vector<1x8x128xbf16> to vector<8x128xbf16>
    %c0_6 = arith.constant 0 : index
    %c0_7 = arith.constant 0 : index
    %c0_8 = arith.constant 0 : index
    %7 = vector.load %arg5[%c0_6, %c0_7, %c0_8] : memref<1x8x128xbf16, #tpu.memory_space<vmem>>, vector<1x8x128xbf16>
    %8 = vector.shape_cast %7 : vector<1x8x128xbf16> to vector<8x128xbf16>
    %cst = arith.constant dense<0.000000e+00> : vector<8x8xf32>
    %9 = tpu.matmul %4, %6, %cst {dimension_numbers = #tpu.dot_dimension_numbers<[1], [1], [0], [0], [0, 0, 1, 0], [], []>} : vector<8x128xbf16>, vector<8x128xbf16>, vector<8x8xf32> -> vector<8x8xf32>
    %c0_9 = arith.constant 0 : index
    %c0_10 = arith.constant 0 : index
    %10 = vector.load %arg7[%c0_9, %c0_10] : memref<8x1xf32, #tpu.memory_space<vmem>>, vector<8x1xf32>
    %cst_11 = arith.constant dense<0xFF800000> : vector<8xf32>
    %11 = vector.multi_reduction <maximumf>, %9, %cst_11 [1] : vector<8x8xf32> to vector<8xf32>
    %12 = vector.shape_cast %11 : vector<8xf32> to vector<8x1xf32>
    %13 = arith.maximumf %10, %12 : vector<8x1xf32>
    %14 = arith.subf %10, %13 : vector<8x1xf32>
    %15 = math.exp %14 : vector<8x1xf32>
    %16 = vector.broadcast %13 : vector<8x1xf32> to vector<8x8xf32>
    %17 = arith.subf %9, %16 : vector<8x8xf32>
    %18 = math.exp %17 : vector<8x8xf32>
    %c0_12 = arith.constant 0 : index
    %c0_13 = arith.constant 0 : index
    %19 = vector.load %arg8[%c0_12, %c0_13] : memref<8x1xf32, #tpu.memory_space<vmem>>, vector<8x1xf32>
    %20 = arith.mulf %15, %19 : vector<8x1xf32>
    %cst_14 = arith.constant dense<0.000000e+00> : vector<8xf32>
    %21 = vector.multi_reduction <add>, %18, %cst_14 [1] : vector<8x8xf32> to vector<8xf32>
    %22 = vector.shape_cast %21 : vector<8xf32> to vector<8x1xf32>
    %23 = arith.addf %20, %22 : vector<8x1xf32>
    %c0_15 = arith.constant 0 : index
    %c0_16 = arith.constant 0 : index
    %24 = vector.load %arg8[%c0_15, %c0_16] : memref<8x1xf32, #tpu.memory_space<vmem>>, vector<8x1xf32>
    tpu.vector_store %arg8[%c0_15, %c0_16], %23 {strides = array<i32>} : memref<8x1xf32, #tpu.memory_space<vmem>>, vector<8x1xf32>,
    %c0_17 = arith.constant 0 : index
    %c0_18 = arith.constant 0 : index
    %25 = vector.load %arg9[%c0_17, %c0_18] : memref<8x128xf32, #tpu.memory_space<vmem>>, vector<8x128xf32>
    %26 = vector.broadcast %15 : vector<8x1xf32> to vector<8x128xf32>
    %27 = arith.mulf %26, %25 : vector<8x128xf32>
    %28 = arith.truncf %18 : vector<8x8xf32> to vector<8x8xbf16>
    %cst_19 = arith.constant dense<0.000000e+00> : vector<8x128xf32>
    %29 = tpu.matmul %28, %8, %cst_19 {dimension_numbers = #tpu.dot_dimension_numbers<[1], [0], [0], [1], [0, 0, 1, 1], [], []>} : vector<8x8xbf16>, vector<8x128xbf16>, vector<8x128xf32> -> vector<8x128xf32>
    %30 = arith.addf %27, %29 : vector<8x128xf32>
    %c0_20 = arith.constant 0 : index
    %c0_21 = arith.constant 0 : index
    %31 = vector.load %arg9[%c0_20, %c0_21] : memref<8x128xf32, #tpu.memory_space<vmem>>, vector<8x128xf32>
    tpu.vector_store %arg9[%c0_20, %c0_21], %30 {strides = array<i32>} : memref<8x128xf32, #tpu.memory_space<vmem>>, vector<8x128xf32>,
    %c0_22 = arith.constant 0 : index
    %c0_23 = arith.constant 0 : index
    %32 = vector.load %arg7[%c0_22, %c0_23] : memref<8x1xf32, #tpu.memory_space<vmem>>, vector<8x1xf32>
    tpu.vector_store %arg7[%c0_22, %c0_23], %13 {strides = array<i32>} : memref<8x1xf32, #tpu.memory_space<vmem>>, vector<8x1xf32>,
    %c0_i32_24 = arith.constant 0 : i32
    %33 = arith.cmpi eq, %arg2, %c0_i32_24 : i32
    %34 = arith.extui %33 : i1 to i32
    %c0_i32_25 = arith.constant 0 : i32
    %35 = arith.cmpi ne, %34, %c0_i32_25 : i32
    scf.if %35 {
      %c0_26 = arith.constant 0 : index
      %c0_27 = arith.constant 0 : index
      %36 = vector.load %arg8[%c0_26, %c0_27] : memref<8x1xf32, #tpu.memory_space<vmem>>, vector<8x1xf32>
      %37 = tpu.reciprocal %36 {approx = true} : vector<8x1xf32> -> vector<8x1xf32>
      %c0_28 = arith.constant 0 : index
      %c0_29 = arith.constant 0 : index
      %38 = vector.load %arg9[%c0_28, %c0_29] : memref<8x128xf32, #tpu.memory_space<vmem>>, vector<8x128xf32>
      %39 = vector.broadcast %37 : vector<8x1xf32> to vector<8x128xf32>
      %40 = arith.mulf %38, %39 : vector<8x128xf32>
      %c0_30 = arith.constant 0 : index
      %c0_31 = arith.constant 0 : index
      %c0_32 = arith.constant 0 : index
      %41 = vector.load %arg6[%c0_30, %c0_31, %c0_32] : memref<1x8x128xf32, #tpu.memory_space<vmem>>, vector<1x8x128xf32>
      %42 = vector.shape_cast %41 : vector<1x8x128xf32> to vector<8x128xf32>
      %43 = vector.shape_cast %40 : vector<8x128xf32> to vector<1x8x128xf32>
      tpu.vector_store %arg6[%c0_30, %c0_31, %c0_32], %43 {strides = array<i32>} : memref<1x8x128xf32, #tpu.memory_space<vmem>>, vector<1x8x128xf32>,
    } else {
    }
    return
  }
  func.func @transform_0(%arg0: i32, %arg1: i32, %arg2: i32) -> (i32, i32, i32) {
    %c0_i32 = arith.constant 0 : i32
    %c0_i32_0 = arith.constant 0 : i32
    return %arg0, %arg1, %c0_i32 : i32, i32, i32
  }
  func.func @transform_1(%arg0: i32, %arg1: i32, %arg2: i32) -> (i32, i32, i32) {
    %c0_i32 = arith.constant 0 : i32
    %c0_i32_0 = arith.constant 0 : i32
    return %arg0, %arg2, %c0_i32 : i32, i32, i32
  }
  func.func @transform_2(%arg0: i32, %arg1: i32, %arg2: i32) -> (i32, i32, i32) {
    %c0_i32 = arith.constant 0 : i32
    %c0_i32_0 = arith.constant 0 : i32
    return %arg0, %arg2, %c0_i32 : i32, i32, i32
  }
  func.func @transform_3(%arg0: i32, %arg1: i32, %arg2: i32) -> (i32, i32, i32) {
    %c0_i32 = arith.constant 0 : i32
    %c0_i32_0 = arith.constant 0 : i32
    return %arg0, %arg1, %c0_i32 : i32, i32, i32
  }
}

</mosaic_0001>

<bundles_post_ra>
// kernel: tpu_custom_call.1
= control target key start
LH: loop header
LB: loop body
LE: loop exit
PB: predicated region body
PF: predicated region fallthrough
CT: control target
= control target key end

     0   :  { %s1002_s0 = inlined_call_operand.hbm [shape: bf16[2,8,128], index: 0, kind: input, shape index: {}]   ;;  %s1003_s1 = inlined_call_operand.hbm [shape: bf16[2,8,128], index: 1, kind: input, shape index: {}]   ;;  %s1004_s2 = inlined_call_operand.hbm [shape: bf16[2,8,128], index: 2, kind: input, shape index: {}]   ;;  %s1005_s3 = inlined_call_operand.hbm [shape: f32[2,8,128], index: 3, kind: output, shape index: {}]  }
   0x1   :  { %1008 = sst [smem:[#allocation18_spill]] %s1003_s1 }
   0x2   :  { %8 = vsyncpa [#allocation6], 0 }
   0x3   :  { %10 = vsyncpa [#allocation6 + $0x1], 0 }
   0x4   :  { %11 = vsyncpa [#allocation9], 0 }
   0x5   :  { %13 = vsyncpa [#allocation9 + $0x1], 0 }
   0x6   :  { %14 = vsyncpa [#allocation7], 0 }
   0x7   :  { %16 = vsyncpa [#allocation7 + $0x1], 0  ;;  %s837_s12 = smov 0   ;;  %s839_s13 = smov 0  }
   0x8   :  { %s841_s14 = smov 0   ;;  %s843_s15 = smov 0  }
   0x9   :  { %s845_s16 = smov 0   ;;  %s847_s17 = smov 0  }
   0xa LB: > { %1009 = sst [smem:[#allocation15_spill]] %s808_s16  ;;  %s868_s18 = sadd.s32 4294967295, %s812_s17   ;;  %s812_s17 = sphi %s847_s17, %s22_s17   ;;  %s808_s16 = sphi %s845_s16, %s1025_s16   ;;  %s804_s15 = sphi %s843_s15, %s1020_s15   ;;  %s800_s14 = sphi %s841_s14, %s1024_s14   ;;  %s796_s13 = sphi %s839_s13, %s1023_s13   ;;  %s792_s12 = sphi %s837_s12, %s1022_s12  }
   0xb   : > { %s533_s19 = sadd.s32 4294967294, %s812_s17   ;;  %s41_s20 = sadd.s32 1, %s808_s16 }
   0xc   : > { %s50_s21 = sadd.s32 1, %s800_s14  ;;  %p43_p0 = scmp.ge.s32.totalorder %s41_s20, 2 }
   0xd   : > { %p57_p1 = scmp.ne.s32.totalorder %s800_s14, %s796_s13  ;;  %p58_p2 = scmp.eq.s32.totalorder %s812_s17, 0 }
   0xe   : > { %p63_p3 = scmp.ne.s32.totalorder %s796_s13, %s792_s12  ;;  %s1027_s20 = smov (%p43_p0, %s41_s20), 0 }
   0xf   : > { %1010 = sst [smem:[#allocation16_spill]] %s1027_s20  ;;  %p880_p4 = por %p58_p2, %p57_p1 }
  0x10   : > { %p64_p5 = scmp.eq.s32.totalorder %s868_s18, 0  ;;  %s45_s23 = ssub.s32 %s808_s16, %s1027_s20 }
  0x11   : > { %p145_p6 = scmp.eq.s32.totalorder %s868_s18, 1  ;;  %p48_p7 = scmp.eq.s32.totalorder %s45_s23, 0 }
  0x12   : > { %p888_p8 = por %p64_p5, %p63_p3  ;;  %p151_p10 = scmp.eq.s32.totalorder %s533_s19, 1 }
  0x13   : > { %p892_p9 = por %p145_p6, %p57_p1  ;;  %p535_p12 = scmp.ge.s32.totalorder %s812_s17, 2 }
  0x14   : > { %s897_s26 = scalar_select %p48_p7, %s800_s14, %s50_s21  }
  0x15   : > { %p899_p11 = por %p151_p10, %p63_p3  ;;  %p574_p13 = scmp.lt.s32.totalorder %s812_s17, 2 }
  0x16   : > { %1014 = sst [smem:[#allocation17_spill]] %s897_s26  ;;  %s171_s28 = sand.u32 1, %s800_s14  }
  0x17   : > { %s536_s29 = sshll.u32 %s171_s28, 2  ;;  %s537_s30 = sshll.u32 %s808_s16, 2 }
  0x18   : > { %p909_p0 = pnand %p574_p13, %p880_p4  ;;  %s191_s5 = sand.u32 1, %s812_s17  }
  0x19   : > { %s1017_s1 = sld [smem:[#allocation18_spill]]  ;;  %s195_s10 = scalar_lea.vmem [#allocation8], %s536_s29 }
  0x1a   : > { %s204_s11 = sshll.u32 %s195_s10, 4  ;;  %s192_s19 = scalar_lea.sflag [#allocation9], %s191_s5  ;;  %s205_s11 = int_to_ptr.vmem [resolvable:$true] %s204_s11 }
  0x1b   : > { %p542_p1 = scmp.ge.s32.totalorder %s812_s17, 1  ;;  %p229_p2 = scmp.lt.s32.totalorder %s812_s17, 3 }
  0x1c   : > { %s180_s6 = scalar_lea.hbm %s1002_s0, %s537_s30  ;;  %s172_s10 = scalar_lea.sflag [#allocation6], %s171_s28 }
  0x1d   : > { %p921_p3 = pnand %p542_p1, %p229_p2  ;;  %s182_s7 = sshll.u32 %s180_s6, 4  ;;  %s183_s7 = int_to_ptr.hbm [resolvable:$true] %s182_s7 }
  0x1e   : > { %s215_s16 = scalar_lea.vmem [#allocation10], %s536_s29  ;;  %s938_s22 = sand.u32 (!%p921_p3), 1, %s796_s13  }
  0x1f   : > { %s200_s8 = scalar_lea.hbm %s1017_s1, %s537_s30  ;;  %s224_s26 = sshll.u32 %s215_s16, 4  ;;  %s225_s26 = int_to_ptr.vmem [resolvable:$true] %s224_s26 }
  0x20   : > { %s202_s9 = sshll.u32 %s200_s8, 4  ;;  %s175_s8 = scalar_lea.vmem [#allocation5], %s536_s29  ;;  %s203_s9 = int_to_ptr.hbm [resolvable:$true] %s202_s9 }
  0x21   : > { %566 = dma.hbm_to_vmem [thread:$0]  (!%p909_p0), %s203_s9, 64, %s205_s11, %s192_s19  }
  0x22   : > { %s184_s1 = sshll.u32 %s175_s8, 4  ;;  %s220_s11 = scalar_lea.hbm %s1004_s2, %s537_s30  ;;  %s185_s1 = int_to_ptr.vmem [resolvable:$true] %s184_s1 }
  0x23   : > { %563 = dma.hbm_to_vmem [thread:$0]  (!%p909_p0), %s183_s7, 64, %s185_s1, %s172_s10  }
  0x24   : > { %s222_s20 = sshll.u32 %s220_s11, 4  ;;  %233 = sbr.rel (%p921_p3) target bundleno = 654 (0x28e), region = 32  ;;  %s223_s20 = int_to_ptr.hbm [resolvable:$true] %s222_s20 }
  0x25   : > { %569 = dma.hbm_to_vmem [thread:$0]  (!%p909_p0), %s223_s20, 64, %s225_s26, %s192_s19  }
  0x26   : > { %s941_s1 = sshll.u32 (!%p921_p3), %s938_s22, 2  ;;  %s236_s28 = scalar_lea.sflag (!%p921_p3), [#allocation6], %s938_s22 }
  0x27   : > { %s239_s30 = scalar_lea.vmem (!%p921_p3), [#allocation5], %s941_s1 }
  0x29   : > { %779 = dma.done.wait (%p888_p8), %s236_s28, 64  }
  0x2a   : > { %781 = vsyncadd (%p888_p8), %s236_s28, 4294967232  ;;  %s245_s16 = sand.u32 1, %s868_s18   ;;  %s249_s26 = scalar_lea.vmem [#allocation8], %s941_s1 }
  0x2b   : > { %s246_s20 = scalar_lea.sflag [#allocation9], %s245_s16 }
  0x2c   : > { %783 = dma.done.wait (%p888_p8), %s246_s20, 128  }
  0x2d   : > { %785 = vsyncadd (%p888_p8), %s246_s20, 4294967168  ;;  %v303_v0 = vld [vmem:[%s249_s26] sm:$0xf]  ;;  %v302_v1 = vld [vmem:[%s239_s30] sm:$0xf]  ;;  %vm298_vm0 = vcmask 7168  }
  0x2e   : > { %312 = vmatpush.bf16.xpose.msra.mxu0 %v303_v0  ;;  %v814_v2 = vmov -inf   ;;  %vm319_vm1 = vcmask 64512   ;;  %v815_v6 = vmov 0   ;;  %v816_v7 = vmov 0.0   ;;  %s259_s18 = scalar_lea.vmem [#allocation10], %s941_s1  ;;  %s546_s24 = sshll.u32 %s938_s22, 3 }
  0x2f   : > { %299 = vst.msk [vmem:[#allocation2] sm:$0xff] %vm298_vm0, %v814_v2  ;;  %627 = vset.pattern.permute.xlu0 %v815_v6  ;;  %628 = vset.pattern.permute.xlu1 %v815_v6  ;;  %v304_v12 = vld [vmem:[%s259_s18] sm:$0xf]  ;;  %vm354_vm2 = vcmask 1043456   ;;  %s549_s29 = sshll.u32 %s804_s15, 3  ;;  %s292_s23 = scalar_lea.vmem [#allocation11], %s546_s24 }
  0x30   : > { %629 = vset.pattern.permute.xlu2 %v815_v6  ;;  %300 = vst.msk [vmem:[#allocation3] sm:$0xff] %vm298_vm0, %v816_v7  ;;  %v356_v13 = vsel %vm354_vm2, %v304_v12, 0  ;;  %s399_s21 = scalar_lea.hbm %s1005_s3, %s549_s29  ;;  %s401_s6 = sshll.u32 %s292_s23, 4  ;;  %s402_s6 = int_to_ptr.vmem [resolvable:$true] %s401_s6 }
  0x31   : > { %365 = vmatpush.bf16.msra.mxu1 %v356_v13  ;;  %s403_s7 = sshll.u32 %s399_s21, 4  ;;  %s388_s8 = scalar_lea.sflag [#allocation7], %s938_s22  ;;  %s404_s7 = int_to_ptr.hbm [resolvable:$true] %s403_s7 }
  0x32   : > { %s740_s10 = sshra.s32 %s404_s7, 4  ;;  %s746_s11 = scalar_lea.hbm %s1005_s3, 16  ;;  %s741_s10 = int_to_ptr.hbm [resolvable:$true] %s740_s10 }
  0x33   : > { %s742_s5 = scalar_lea.hbm %s741_s10, 8  ;;  %p747_p7 = scmp.lt.s32.totalorder %s741_s10, %s1005_s3 }
  0x34   : > { %p743_p4 = scmp.ne.s32.totalorder %s741_s10, %s742_s5  ;;  %p748_p8 = scmp.lt.s32.totalorder %s746_s11, %s742_s5 }
  0x35   : > { %313 = vmatmul.bf16.vlgmr.msra.gmra.mxu0 %v302_v1 }
  0x36   : > { %v318_v8 = vld [vmem:[#allocation2] sm:$0xff]  ;;  %p744_p5 = pnand %p743_p4, %p892_p9  ;;  %p749_p10 = por %p748_p8, %p747_p7 }
  0x37   : > { %v335_v22 = vld [vmem:[#allocation3] sm:$0xff] }
  0x38   : > { %p745_p6 = pneg %p744_p5 }
  0x3a   : > { %p750_p13 = pnand %p749_p10, %p745_p6 }
  0xb2   : > { %v314_v3 = vpop.f32.mrf.mxu0 }
  0xb3   : > { %v320_v4 = vsel %vm319_vm1, %v314_v3, -inf }
  0xb4   : > { %321 = vmax.xlane.f32.xlu0 %v320_v4 }
  0xba   : > { %v316_v5 = vpop.f32.mrf.mxu0 }
 0x127   : > { %v322_v9 = vpop.xlane.xlu0 %321 }
 0x128   : > { %v323_v10 = vmax.f32 %v318_v8, %v322_v9 }
 0x12a   : > { %v324_v11 = vsub.f32 %v318_v8, %v323_v10  ;;  %373 = vst.msk [vmem:[#allocation2] sm:$0xff] %vm298_vm0, %v323_v10  ;;  %329 = vperm.xlu0 %627, %v323_v10  }
 0x12c   : > { %v325_v20 = vmul.f32 1.442695, %v324_v11 }
 0x19c   : > { %v330_v14 = vpop.permute.xlu0 %329 }
 0x19d   : > { %v332_v15 = vsub.f32 %v314_v3, %v330_v14 }
 0x19f   : > { %v333_v16 = vmul.f32 1.442695, %v332_v15 }
 0x1a1   : > { %630 = vpow2.f32 %v333_v16 }
 0x1a2   : > { %632 = vpow2.f32 %v325_v20 }
 0x1a7   : > { %v631_v17 = vpop.eup %630 }
 0x1a8   : > { %v337_v18 = vsel %vm319_vm1, %v631_v17, 0.0  ;;  %v350_v19 = vpack.c.bf16 %v631_v17, %v631_v17  ;;  %v633_v21 = vpop.eup %632 }
 0x1a9   : > { %338 = vadd.xlane.f32.xlu1 %v337_v18  ;;  %v336_v23 = vmul.f32 %v633_v21, %v335_v22 }
 0x1aa   : > { %547 = vmatmul.msk.bf16.vlgmr.msra.gmra.mxu1 %vm319_vm1, %v350_v19 }
 0x1c2   : > { %346 = vperm.xlu1 %628, %v633_v21  }
 0x21c   : > { %v339_v24 = vpop.xlane.xlu1 %338 }
 0x21d   : > { %v340_v25 = vadd.f32 %v339_v24, %v336_v23 }
 0x21f   : > { %342 = vst.msk [vmem:[#allocation3] sm:$0xff] %vm298_vm0, %v340_v25 }
 0x226   : > { %v377_v26 = vld [vmem:[#allocation3] sm:$0xff] }
 0x227   : > { %v367_v27 = vpop.f32.mrf.mxu1  ;;  %634 = vrcp.f32 %v377_v26 }
 0x22d   : > { %v635_v28 = vpop.eup %634 }
 0x22e   : > { %382 = vperm.xlu2 %629, %v635_v28  }
 0x22f   : > { %v369_v29 = vpop.f32.mrf.mxu1 }
 0x234   : > { %v347_v30 = vpop.permute.xlu1 %346 }
 0x235   : > { %v349_v31 = vmul.f32 0.0, %v347_v30 }
 0x237   : > { %v371_v32 = vadd.f32 %v367_v27, %v349_v31 }
 0x288   : > { %v383_v33 = vpop.permute.xlu2 %382 }
 0x289   : > { %v385_v34 = vmul.f32 %v383_v33, %v371_v32 }
 0x28b   : > { %386 = vst [vmem:[%s292_s23] sm:$0xff] %v385_v34 }
 0x28c   : > { %753 = shalt.err (!%p750_p13)
}
 0x28d   : > { %558 = dma.vmem_to_hbm [thread:$0]  (%p892_p9), %s402_s6, 128, %s404_s7, %s388_s8  }
 0x28e PF: > { %s415_s22 = sand.u32 1, %s792_s12   ;;  %p571_p0 = pnand %p535_p12, %p899_p11 }
 0x28f   : > { %s416_s30 = scalar_lea.sflag [#allocation7], %s415_s22 }
 0x290   : > { %p572_p1 = pneg %p571_p0 }
 0x292   : > { %787 = dma.done.wait (%p572_p1), %s416_s30, 128  }
 0x293   : > { %789 = vsyncadd (%p572_p1), %s416_s30, 4294967168  ;;  %s22_s17 = sadd.s32 1, %s812_s17   ;;  %s1019_s16 = sld [smem:[#allocation17_spill]] }
 0x294   : > { %p19_p2 = scmp.ge.s32.totalorder %s22_s17, 4   ;;  %s1020_s15 = sld [smem:[#allocation15_spill]] }
 0x295   : > { %s1021_s25 = sld [smem:[#allocation16_spill]]  ;;  %s1022_s12 = smov %s796_s13 }
 0x296   : > { %s1023_s13 = smov %s800_s14 }
 0x297   :  { %21 = sbr.rel (!%p19_p2) target bundleno = 10 (0xa), region = 109 }
 0x299   : > { %s1024_s14 = smov %s1019_s16 }
 0x29b   : > { %s1025_s16 = smov %s1021_s25 }
 0x29c   :  { %422 = vsyncpa [#allocation6], 1 }
 0x29d   :  { %424 = vsyncpa [#allocation6 + $0x1], 1 }
 0x29e   :  { %425 = vsyncpa [#allocation9], 1 }
 0x29f   :  { %427 = vsyncpa [#allocation9 + $0x1], 1 }
 0x2a0   :  { %428 = vsyncpa [#allocation7], 1 }
 0x2a1   :  { %430 = vsyncpa [#allocation7 + $0x1], 1 }

</bundles_post_ra>
